<compile_context>
chip_gen: v7x
topology: tpu7x:2x2x1
jax: 0.10.0
libtpu: 0.0.40
codegen_flags: <defaults>
</compile_context>

<pallas_src>
import jax
import jax.numpy as jnp
from jax.experimental import pallas as pl
from jax.experimental.pallas import tpu as pltpu

# ---- model hyper-parameters (small, synthetic) ------------------------------
B = 2              # batch
C_IN = 4           # input channels
H = W = 16         # spatial
C_OUT = 32         # conv output channels ("backbone features")
NUM_LABELS = 10    # classifier head size
KH = KW = 3        # conv kernel

# ---- TPU-friendly (padded) sizes --------------------------------------------
HW = H * W                    # 256
M_TOTAL = B * HW              # 512  batch folded into the matmul M dimension
K_CONV = KH * KW * C_IN       # 36   fused im2col contraction dimension
C_PAD = 128                   # conv channels padded to a full lane width
N_PAD = 128                   # logits padded to a full lane width (dense store)
B_PAD = 8                     # batch padded to a full sublane width


def _timm_like_kernel(patches_ref, wconv_ref, bconv_ref, pool_ref,
                      whead_ref, bhead_ref, out_ref):
    """Single invocation, whole (padded) batch.

    patches_ref : (M_TOTAL, K_CONV)  im2col patches, batch folded into M
    wconv_ref   : (K_CONV, C_PAD)    conv weights, channels zero-padded to 128
    bconv_ref   : (1, C_PAD)         conv bias (padded)
    pool_ref    : (B_PAD, M_TOTAL)   per-batch average-pool matrix (x 1/(H*W))
    whead_ref   : (C_PAD, N_PAD)     classifier weights (zero-padded)
    bhead_ref   : (1, N_PAD)         classifier bias (zero-padded)
    out_ref     : (B_PAD, N_PAD)     lane-dense padded logits
    """
    # Conv2d(3x3, pad=1) as a single im2col matmul: (512, 36) @ (36, 128).
    feat = jnp.dot(patches_ref[...], wconv_ref[...],
                   preferred_element_type=jnp.float32)
    # bias + ReLU (lane-dense: last dim = 128)
    feat = jnp.maximum(feat + bconv_ref[...], 0.0)           # (512, 128)

    # Global average pool fused into an MXU matmul with a pre-scaled
    # indicator matrix: (8, 512) @ (512, 128) -> (8, 128) pooled features.
    pooled = jnp.dot(pool_ref[...], feat,
                     preferred_element_type=jnp.float32)     # (B_PAD, C_PAD)

    # Linear classifier head for the whole padded batch, lane-dense output.
    out_ref[...] = (
        jnp.dot(pooled, whead_ref[...], preferred_element_type=jnp.float32)
        + bhead_ref[...]
    )                                                          # (B_PAD, N_PAD)


@jax.jit
def timm_model_forward(image_nchw, params):
    """image_nchw: (B, C_IN, H, W) float32  ->  logits (B, NUM_LABELS)."""
    wconv, bconv, whead, bhead = params

    # ---- layout plumbing (plain JAX / XLA, outside the kernel) --------------
    # NCHW -> NHWC, zero-pad spatially (padding=1).
    x = jnp.transpose(image_nchw, (0, 2, 3, 1))               # (B, H, W, C_IN)
    x_pad = jnp.pad(x, ((0, 0), (1, 1), (1, 1), (0, 0)))      # (B, H+2, W+2, C_IN)

    # im2col: (B*H*W, KH*KW*C_IN), tap order (kh, kw, c) matches wconv reshape.
    taps = [x_pad[:, kh:kh + H, kw:kw + W, :]
            for kh in range(KH) for kw in range(KW)]           # each (B, H, W, C_IN)
    patches = jnp.stack(taps, axis=3).reshape(M_TOTAL, K_CONV)  # (512, 36)

    # Conv weights flattened the same way, channels zero-padded to 128 lanes.
    wconv_flat = wconv.reshape(K_CONV, C_OUT)
    wconv_pad = jnp.zeros((K_CONV, C_PAD), jnp.float32).at[:, :C_OUT].set(wconv_flat)
    bconv_pad = jnp.zeros((1, C_PAD), jnp.float32).at[0, :C_OUT].set(bconv)

    # Average-pool matrix: pool[b, m] = 1/(H*W) iff m belongs to batch b.
    row_b = jax.lax.broadcasted_iota(jnp.int32, (B_PAD, M_TOTAL), 0)
    col_b = jax.lax.broadcasted_iota(jnp.int32, (B_PAD, M_TOTAL), 1) // HW
    pool_mat = jnp.where(row_b == col_b, 1.0 / HW, 0.0).astype(jnp.float32)

    # Classifier head, zero-padded to (128, 128) / (1, 128).
    whead_pad = jnp.zeros((C_PAD, N_PAD), jnp.float32).at[:C_OUT, :NUM_LABELS].set(whead)
    bhead_pad = jnp.zeros((1, N_PAD), jnp.float32).at[0, :NUM_LABELS].set(bhead)

    out = pl.pallas_call(
        _timm_like_kernel,
        out_shape=jax.ShapeDtypeStruct((B_PAD, N_PAD), jnp.float32),
        grid_spec=pltpu.PrefetchScalarGridSpec(
            num_scalar_prefetch=0,
            grid=(1,),  # single invocation: batch is folded into the matmul M dim
            in_specs=[
                pl.BlockSpec((M_TOTAL, K_CONV), lambda i: (0, 0)),
                pl.BlockSpec((K_CONV, C_PAD), lambda i: (0, 0)),
                pl.BlockSpec((1, C_PAD), lambda i: (0, 0)),
                pl.BlockSpec((B_PAD, M_TOTAL), lambda i: (0, 0)),
                pl.BlockSpec((C_PAD, N_PAD), lambda i: (0, 0)),
                pl.BlockSpec((1, N_PAD), lambda i: (0, 0)),
            ],
            out_specs=pl.BlockSpec((B_PAD, N_PAD), lambda i: (0, 0)),
        ),
        compiler_params=pltpu.CompilerParams(
            dimension_semantics=("arbitrary",)
        ),
    )(patches, wconv_pad, bconv_pad, pool_mat, whead_pad, bhead_pad)

    # Slice away lane/sublane padding outside the kernel.
    return out[:B, :NUM_LABELS]


def _reference_forward(image_nchw, params):
    """Plain-JAX reference of the same forward pass (for sanity check)."""
    wconv, bconv, whead, bhead = params
    x = jnp.transpose(image_nchw, (0, 2, 3, 1))
    x_pad = jnp.pad(x, ((0, 0), (1, 1), (1, 1), (0, 0)))
    feat = jnp.zeros((B, H, W, C_OUT), jnp.float32)
    for kh in range(KH):
        for kw in range(KW):
            feat = feat + jnp.einsum(
                "bhwc,co->bhwo", x_pad[:, kh:kh + H, kw:kw + W, :], wconv[kh, kw]
            )
    feat = jnp.maximum(feat + bconv, 0.0)
    pooled = jnp.mean(feat.reshape(B, HW, C_OUT), axis=1)
    return pooled @ whead + bhead


def init_params(key):
    k1, k2, k3, k4 = jax.random.split(key, 4)
    wconv = jax.random.normal(k1, (KH, KW, C_IN, C_OUT), jnp.float32) * 0.1
    bconv = jax.random.normal(k2, (C_OUT,), jnp.float32) * 0.05
    whead = jax.random.normal(k3, (C_OUT, NUM_LABELS), jnp.float32) * 0.1
    bhead = jax.random.normal(k4, (NUM_LABELS,), jnp.float32) * 0.01
    return wconv, bconv, whead, bhead


if __name__ == "__main__":
    key = jax.random.PRNGKey(0)
    k_img, k_par = jax.random.split(key)

    image = jax.random.normal(k_img, (B, C_IN, H, W), jnp.float32)  # NCHW like PyTorch
    params = init_params(k_par)

    logits = timm_model_forward(image, params)
    logits = jax.block_until_ready(logits)

    ref = _reference_forward(image, params)
    assert logits.shape == (B, NUM_LABELS)
    assert jnp.allclose(logits, ref, atol=1e-4, rtol=1e-4), "mismatch vs reference"

    print("KERNEL_OK")
</pallas_src>

<mosaic_0001>
module attributes {stable_mosaic.version = 11 : i64} {
  func.func @_timm_like_kernel(%arg0: i32, %arg1: memref<512x36xf32, #tpu.memory_space<vmem>>, %arg2: memref<36x128xf32, #tpu.memory_space<vmem>>, %arg3: memref<1x128xf32, #tpu.memory_space<vmem>>, %arg4: memref<8x512xf32, #tpu.memory_space<vmem>>, %arg5: memref<128x128xf32, #tpu.memory_space<vmem>>, %arg6: memref<1x128xf32, #tpu.memory_space<vmem>>, %arg7: memref<8x128xf32, #tpu.memory_space<vmem>>) attributes {dimension_semantics = [#tpu.dimension_semantics<arbitrary>], iteration_bounds = array<i64: 1>, scalar_prefetch = 0 : i64, scratch_operands = 0 : i64, tpu.core_type = #tpu.core_type<tc>, window_params = [{pipeline_mode = #tpu.pipeline_mode<synchronous>, transform_indices = @transform_0, window_bounds = array<i64: 512, 36>}, {pipeline_mode = #tpu.pipeline_mode<synchronous>, transform_indices = @transform_1, window_bounds = array<i64: 36, 128>}, {pipeline_mode = #tpu.pipeline_mode<synchronous>, transform_indices = @transform_2, window_bounds = array<i64: 1, 128>}, {pipeline_mode = #tpu.pipeline_mode<synchronous>, transform_indices = @transform_3, window_bounds = array<i64: 8, 512>}, {pipeline_mode = #tpu.pipeline_mode<synchronous>, transform_indices = @transform_4, window_bounds = array<i64: 128, 128>}, {pipeline_mode = #tpu.pipeline_mode<synchronous>, transform_indices = @transform_5, window_bounds = array<i64: 1, 128>}, {pipeline_mode = #tpu.pipeline_mode<synchronous>, transform_indices = @transform_6, window_bounds = array<i64: 8, 128>}]} {
    %c0 = arith.constant 0 : index
    %c0_0 = arith.constant 0 : index
    %0 = vector.load %arg1[%c0, %c0_0] : memref<512x36xf32, #tpu.memory_space<vmem>>, vector<512x36xf32>
    %c0_1 = arith.constant 0 : index
    %c0_2 = arith.constant 0 : index
    %1 = vector.load %arg2[%c0_1, %c0_2] : memref<36x128xf32, #tpu.memory_space<vmem>>, vector<36x128xf32>
    %cst = arith.constant dense<0.000000e+00> : vector<512x128xf32>
    %2 = tpu.matmul %0, %1, %cst {dimension_numbers = #tpu.dot_dimension_numbers<[1], [0], [0], [1], [0, 0, 1, 1], [], []>} : vector<512x36xf32>, vector<36x128xf32>, vector<512x128xf32> -> vector<512x128xf32>
    %c0_3 = arith.constant 0 : index
    %c0_4 = arith.constant 0 : index
    %3 = vector.load %arg3[%c0_3, %c0_4] : memref<1x128xf32, #tpu.memory_space<vmem>>, vector<1x128xf32>
    %4 = vector.broadcast %3 : vector<1x128xf32> to vector<512x128xf32>
    %5 = arith.addf %2, %4 : vector<512x128xf32>
    %cst_5 = arith.constant 0.000000e+00 : f32
    %6 = vector.broadcast %cst_5 : f32 to vector<512x128xf32>
    %7 = arith.maximumf %5, %6 : vector<512x128xf32>
    %c0_6 = arith.constant 0 : index
    %c0_7 = arith.constant 0 : index
    %8 = vector.load %arg4[%c0_6, %c0_7] : memref<8x512xf32, #tpu.memory_space<vmem>>, vector<8x512xf32>
    %cst_8 = arith.constant dense<0.000000e+00> : vector<8x128xf32>
    %9 = tpu.matmul %8, %7, %cst_8 {dimension_numbers = #tpu.dot_dimension_numbers<[1], [0], [0], [1], [0, 0, 1, 1], [], []>} : vector<8x512xf32>, vector<512x128xf32>, vector<8x128xf32> -> vector<8x128xf32>
    %c0_9 = arith.constant 0 : index
    %c0_10 = arith.constant 0 : index
    %10 = vector.load %arg5[%c0_9, %c0_10] : memref<128x128xf32, #tpu.memory_space<vmem>>, vector<128x128xf32>
    %cst_11 = arith.constant dense<0.000000e+00> : vector<8x128xf32>
    %11 = tpu.matmul %9, %10, %cst_11 {dimension_numbers = #tpu.dot_dimension_numbers<[1], [0], [0], [1], [0, 0, 1, 1], [], []>} : vector<8x128xf32>, vector<128x128xf32>, vector<8x128xf32> -> vector<8x128xf32>
    %c0_12 = arith.constant 0 : index
    %c0_13 = arith.constant 0 : index
    %12 = vector.load %arg6[%c0_12, %c0_13] : memref<1x128xf32, #tpu.memory_space<vmem>>, vector<1x128xf32>
    %13 = vector.broadcast %12 : vector<1x128xf32> to vector<8x128xf32>
    %14 = arith.addf %11, %13 : vector<8x128xf32>
    %c0_14 = arith.constant 0 : index
    %c0_15 = arith.constant 0 : index
    %15 = vector.load %arg7[%c0_14, %c0_15] : memref<8x128xf32, #tpu.memory_space<vmem>>, vector<8x128xf32>
    tpu.vector_store %arg7[%c0_14, %c0_15], %14 {strides = array<i32>} : memref<8x128xf32, #tpu.memory_space<vmem>>, vector<8x128xf32>,
    return
  }
  func.func @transform_0(%arg0: i32) -> (i32, i32) {
    %c0_i32 = arith.constant 0 : i32
    %c0_i32_0 = arith.constant 0 : i32
    %c0_i32_1 = arith.constant 0 : i32
    return %c0_i32, %c0_i32_0 : i32, i32
  }
  func.func @transform_1(%arg0: i32) -> (i32, i32) {
    %c0_i32 = arith.constant 0 : i32
    %c0_i32_0 = arith.constant 0 : i32
    %c0_i32_1 = arith.constant 0 : i32
    return %c0_i32, %c0_i32_0 : i32, i32
  }
  func.func @transform_2(%arg0: i32) -> (i32, i32) {
    %c0_i32 = arith.constant 0 : i32
    %c0_i32_0 = arith.constant 0 : i32
    %c0_i32_1 = arith.constant 0 : i32
    return %c0_i32, %c0_i32_0 : i32, i32
  }
  func.func @transform_3(%arg0: i32) -> (i32, i32) {
    %c0_i32 = arith.constant 0 : i32
    %c0_i32_0 = arith.constant 0 : i32
    %c0_i32_1 = arith.constant 0 : i32
    return %c0_i32, %c0_i32_0 : i32, i32
  }
  func.func @transform_4(%arg0: i32) -> (i32, i32) {
    %c0_i32 = arith.constant 0 : i32
    %c0_i32_0 = arith.constant 0 : i32
    %c0_i32_1 = arith.constant 0 : i32
    return %c0_i32, %c0_i32_0 : i32, i32
  }
  func.func @transform_5(%arg0: i32) -> (i32, i32) {
    %c0_i32 = arith.constant 0 : i32
    %c0_i32_0 = arith.constant 0 : i32
    %c0_i32_1 = arith.constant 0 : i32
    return %c0_i32, %c0_i32_0 : i32, i32
  }
  func.func @transform_6(%arg0: i32) -> (i32, i32) {
    %c0_i32 = arith.constant 0 : i32
    %c0_i32_0 = arith.constant 0 : i32
    %c0_i32_1 = arith.constant 0 : i32
    return %c0_i32, %c0_i32_0 : i32, i32
  }
}

</mosaic_0001>

<bundles_post_ra>
// kernel: timm_model_forward.1
= control target key start
LH: loop header
LB: loop body
LE: loop exit
PB: predicated region body
PF: predicated region fallthrough
CT: control target
= control target key end

     0   :  { %vm99_vm0 = vcmask 293888   ;;  %vm292_vm1 = vcmask 1043456   ;;  %vm1451_vm2 = vmmov 0   ;;  %s1939_s1 = inlined_call_operand.vmem [shape: f32[36,128], index: 1, kind: input, shape index: {}]   ;;  %s1940_s0 = inlined_call_operand.vmem [shape: f32[512,36], index: 0, kind: input, shape index: {}]   ;;  %s1941_s3 = inlined_call_operand.vmem [shape: f32[8,512], index: 3, kind: input, shape index: {}]   ;;  %s1942_s2 = inlined_call_operand.vmem [shape: f32[1,128], index: 2, kind: input, shape index: {}]   ;;  %s1943_s4 = inlined_call_operand.vmem [shape: f32[128,128], index: 4, kind: input, shape index: {}]   ;;  %s1944_s5 = inlined_call_operand.vmem [shape: f32[1,128], index: 5, kind: input, shape index: {}]   ;;  %s1945_s6 = inlined_call_operand.vmem [shape: f32[8,128], index: 6, kind: output, shape index: {}]  }
   0x1   :  { %v87_v0 = vld [vmem:[%s1939_s1] sm:$0xff]  ;;  %v88_v1 = vld [vmem:[%s1939_s1 + $0x8] sm:$0xff]  ;;  %v89_v2 = vld [vmem:[%s1939_s1 + $0x10] sm:$0xff] }
   0x2   :  { %v1351_v3 = vpack.c.bf16 %v88_v1, %v87_v0  ;;  %v90_v4 = vld [vmem:[%s1939_s1 + $0x18] sm:$0xff]  ;;  %v23_v5 = vld [vmem:[%s1940_s0] sm:$0xff]  ;;  %v24_v8 = vld [vmem:[%s1940_s0 + $0x8] sm:$0xff] }
   0x3   :  { %v1355_v6 = vpack.c.bf16 %v90_v4, %v89_v2  ;;  %1220 = vmatprep.mubr.msk.f32.mxu0 %vm99_vm0, %v23_v5  ;;  %v91_v7 = vld [vmem:[%s1939_s1 + $0x20] sm:$0xf]  ;;  %v25_v9 = vld [vmem:[%s1940_s0 + $0x10] sm:$0xff]  ;;  %v26_v10 = vld [vmem:[%s1940_s0 + $0x18] sm:$0xff] }
   0x4   :  { %1352 = vmatprep.subr.bf16.mxu0 %v1351_v3  ;;  %v27_v11 = vld [vmem:[%s1940_s0 + $0x20] sm:$0xff]  ;;  %v28_v12 = vld [vmem:[%s1940_s0 + $0x28] sm:$0xff]  ;;  %v29_v13 = vld [vmem:[%s1940_s0 + $0x30] sm:$0xff] }
   0x5   :  { %1354 = vmatpush3.bf16.msra.mxu0 %v1351_v3  ;;  %v30_v14 = vld [vmem:[%s1940_s0 + $0x38] sm:$0xff]  ;;  %v31_v15 = vld [vmem:[%s1940_s0 + $0x40] sm:$0xff]  ;;  %v32_v16 = vld [vmem:[%s1940_s0 + $0x48] sm:$0xff] }
   0x6   :  { %1356 = vmatprep.subr.bf16.mxu0 %v1355_v6  ;;  %v33_v17 = vld [vmem:[%s1940_s0 + $0x50] sm:$0xff]  ;;  %v34_v18 = vld [vmem:[%s1940_s0 + $0x58] sm:$0xff]  ;;  %v35_v19 = vld [vmem:[%s1940_s0 + $0x60] sm:$0xff] }
   0x7   :  { %v36_v20 = vld [vmem:[%s1940_s0 + $0x68] sm:$0xff]  ;;  %v37_v21 = vld [vmem:[%s1940_s0 + $0x70] sm:$0xff]  ;;  %v38_v22 = vld [vmem:[%s1940_s0 + $0x78] sm:$0xff] }
   0x8   :  { %v39_v23 = vld [vmem:[%s1940_s0 + $0x80] sm:$0xff]  ;;  %v40_v24 = vld [vmem:[%s1940_s0 + $0x88] sm:$0xff]  ;;  %v41_v25 = vld [vmem:[%s1940_s0 + $0x90] sm:$0xff] }
   0x9   :  { %1358 = vmatpush3.bf16.msra.mxu0 %v1355_v6  ;;  %v42_v26 = vld [vmem:[%s1940_s0 + $0x98] sm:$0xff]  ;;  %v43_v27 = vld [vmem:[%s1940_s0 + $0xa0] sm:$0xff]  ;;  %v44_v28 = vld [vmem:[%s1940_s0 + $0xa8] sm:$0xff] }
   0xa   :  { %1218 = vmatprep.subr.msk.mxu0 %vm292_vm1, %v91_v7  ;;  %v45_v29 = vld [vmem:[%s1940_s0 + $0xb0] sm:$0xff]  ;;  %v46_v30 = vld [vmem:[%s1940_s0 + $0xb8] sm:$0xff]  ;;  %v47_v31 = vld [vmem:[%s1940_s0 + $0xc0] sm:$0xff] }
   0xb   :  { %v48_v32 = vld [vmem:[%s1940_s0 + $0xc8] sm:$0xff]  ;;  %v49_v33 = vld [vmem:[%s1940_s0 + $0xd0] sm:$0xff]  ;;  %v50_v34 = vld [vmem:[%s1940_s0 + $0xd8] sm:$0xff] }
   0xc   :  { %v51_v35 = vld [vmem:[%s1940_s0 + $0xe0] sm:$0xff]  ;;  %v52_v36 = vld [vmem:[%s1940_s0 + $0xe8] sm:$0xff]  ;;  %v53_v37 = vld [vmem:[%s1940_s0 + $0xf0] sm:$0xff] }
   0xd   :  { %1219 = vmatpush3.msk.msra.mxu0 %vm292_vm1, %v91_v7  ;;  %v54_v38 = vld [vmem:[%s1940_s0 + $0xf8] sm:$0xff]  ;;  %v55_v39 = vld [vmem:[%s1940_s0 + $0x100] sm:$0xff]  ;;  %v56_v40 = vld [vmem:[%s1940_s0 + $0x108] sm:$0xff] }
   0xe   :  { %1221 = vmatmul.mubr.msk.f32.vlgmr.msra.gmra.mrb[0].mxu0 %vm99_vm0, %v24_v8  ;;  %v57_v41 = vld [vmem:[%s1940_s0 + $0x110] sm:$0xff]  ;;  %v58_v42 = vld [vmem:[%s1940_s0 + $0x118] sm:$0xff]  ;;  %v59_v43 = vld [vmem:[%s1940_s0 + $0x120] sm:$0xff] }
   0xf   :  { %1223 = vmatprep.mubr.msk.f32.mxu0 %vm99_vm0, %v25_v9  ;;  %v60_v44 = vld [vmem:[%s1940_s0 + $0x128] sm:$0xff]  ;;  %v61_v45 = vld [vmem:[%s1940_s0 + $0x130] sm:$0xff]  ;;  %v62_v46 = vld [vmem:[%s1940_s0 + $0x138] sm:$0xff] }
  0x10   :  { %v63_v47 = vld [vmem:[%s1940_s0 + $0x140] sm:$0xff]  ;;  %v64_v48 = vld [vmem:[%s1940_s0 + $0x148] sm:$0xff]  ;;  %v65_v49 = vld [vmem:[%s1940_s0 + $0x150] sm:$0xff] }
  0x11   :  { %v66_v50 = vld [vmem:[%s1940_s0 + $0x158] sm:$0xff]  ;;  %v67_v51 = vld [vmem:[%s1940_s0 + $0x160] sm:$0xff]  ;;  %v68_v52 = vld [vmem:[%s1940_s0 + $0x168] sm:$0xff] }
  0x12   :  { %1224 = vmatmul.mubr.msk.f32.gmra.mrb[2].mxu0 %vm99_vm0, %v26_v10  ;;  %v69_v53 = vld [vmem:[%s1940_s0 + $0x170] sm:$0xff]  ;;  %v70_v54 = vld [vmem:[%s1940_s0 + $0x178] sm:$0xff]  ;;  %v71_v55 = vld [vmem:[%s1940_s0 + $0x180] sm:$0xff] }
  0x13   :  { %1226 = vmatprep.mubr.msk.f32.mxu0 %vm99_vm0, %v27_v11  ;;  %v72_v56 = vld [vmem:[%s1940_s0 + $0x188] sm:$0xff]  ;;  %v73_v57 = vld [vmem:[%s1940_s0 + $0x190] sm:$0xff]  ;;  %v74_v58 = vld [vmem:[%s1940_s0 + $0x198] sm:$0xff] }
  0x14   :  { %v75_v59 = vld [vmem:[%s1940_s0 + $0x1a0] sm:$0xff]  ;;  %v76_v60 = vld [vmem:[%s1940_s0 + $0x1a8] sm:$0xff]  ;;  %v77_v61 = vld [vmem:[%s1940_s0 + $0x1b0] sm:$0xff] }
  0x15   :  { %v78_v62 = vld [vmem:[%s1940_s0 + $0x1b8] sm:$0xff]  ;;  %v79_v63 = vld [vmem:[%s1940_s0 + $0x1c0] sm:$0xff]  ;;  %v80_v0 = vld [vmem:[%s1940_s0 + $0x1c8] sm:$0xff] }
  0x16   :  { %1227 = vmatmul.mubr.msk.f32.gmra.mrb[4].mxu0 %vm99_vm0, %v28_v12  ;;  %v81_v1 = vld [vmem:[%s1940_s0 + $0x1d0] sm:$0xff]  ;;  %v82_v2 = vld [vmem:[%s1940_s0 + $0x1d8] sm:$0xff]  ;;  %v83_v3 = vld [vmem:[%s1940_s0 + $0x1e0] sm:$0xff] }
  0x17   :  { %1229 = vmatprep.mubr.msk.f32.mxu0 %vm99_vm0, %v29_v13  ;;  %v84_v4 = vld [vmem:[%s1940_s0 + $0x1e8] sm:$0xff]  ;;  %v85_v5 = vld [vmem:[%s1940_s0 + $0x1f0] sm:$0xff]  ;;  %v86_v6 = vld [vmem:[%s1940_s0 + $0x1f8] sm:$0xff] }
  0x18   :  { %v746_v7 = vld [vmem:[%s1941_s3 + $0x8] sm:$0xff]  ;;  %v1765_v8 = vld [vmem:[%s1942_s2] ss:$0 sm:$0xff] }
  0x19   :  { %813 = vmatprep.mubr.f32.mxu1 %v746_v7 }
  0x1a   :  { %1230 = vmatmul.mubr.msk.f32.gmra.mrb[6].mxu0 %vm99_vm0, %v30_v14 }
  0x1b   :  { %1232 = vmatprep.mubr.msk.f32.mxu0 %vm99_vm0, %v31_v15 }
  0x1e   :  { %1233 = vmatmul.mubr.msk.f32.gmra.mrb[8].mxu0 %vm99_vm0, %v32_v16 }
  0x1f   :  { %1235 = vmatprep.mubr.msk.f32.mxu0 %vm99_vm0, %v33_v17 }
  0x22   :  { %1236 = vmatmul.mubr.msk.f32.gmra.mrb[10].mxu0 %vm99_vm0, %v34_v18 }
  0x23   :  { %1238 = vmatprep.mubr.msk.f32.mxu0 %vm99_vm0, %v35_v19 }
  0x26   :  { %1239 = vmatmul.mubr.msk.f32.gmra.mrb[12].mxu0 %vm99_vm0, %v36_v20 }
  0x27   :  { %1241 = vmatprep.mubr.msk.f32.mxu0 %vm99_vm0, %v37_v21 }
  0x2a   :  { %1242 = vmatmul.mubr.msk.f32.gmra.mrb[14].mxu0 %vm99_vm0, %v38_v22 }
  0x2b   :  { %1244 = vmatprep.mubr.msk.f32.mxu0 %vm99_vm0, %v39_v23 }
  0x2e   :  { %1245 = vmatmul.mubr.msk.f32.gmra.mrb[16].mxu0 %vm99_vm0, %v40_v24 }
  0x2f   :  { %1247 = vmatprep.mubr.msk.f32.mxu0 %vm99_vm0, %v41_v25 }
  0x32   :  { %1248 = vmatmul.mubr.msk.f32.gmra.mrb[18].mxu0 %vm99_vm0, %v42_v26 }
  0x33   :  { %1250 = vmatprep.mubr.msk.f32.mxu0 %vm99_vm0, %v43_v27 }
  0x36   :  { %1251 = vmatmul.mubr.msk.f32.gmra.mrb[20].mxu0 %vm99_vm0, %v44_v28 }
  0x37   :  { %1253 = vmatprep.mubr.msk.f32.mxu0 %vm99_vm0, %v45_v29 }
  0x3a   :  { %1254 = vmatmul.mubr.msk.f32.gmra.mrb[22].mxu0 %vm99_vm0, %v46_v30 }
  0x3b   :  { %1256 = vmatprep.mubr.msk.f32.mxu0 %vm99_vm0, %v47_v31 }
  0x3e   :  { %1257 = vmatmul.mubr.msk.f32.gmra.mrb[24].mxu0 %vm99_vm0, %v48_v32 }
  0x3f   :  { %1259 = vmatprep.mubr.msk.f32.mxu0 %vm99_vm0, %v49_v33 }
  0x42   :  { %1260 = vmatmul.mubr.msk.f32.gmra.mrb[26].mxu0 %vm99_vm0, %v50_v34 }
  0x43   :  { %1262 = vmatprep.mubr.msk.f32.mxu0 %vm99_vm0, %v51_v35 }
  0x46   :  { %1263 = vmatmul.mubr.msk.f32.gmra.mrb[28].mxu0 %vm99_vm0, %v52_v36 }
  0x47   :  { %1265 = vmatprep.mubr.msk.f32.mxu0 %vm99_vm0, %v53_v37 }
  0x4a   :  { %1266 = vmatmul.mubr.msk.f32.gmra.mrb[30].mxu0 %vm99_vm0, %v54_v38 }
  0x4b   :  { %1268 = vmatprep.mubr.msk.f32.mxu0 %vm99_vm0, %v55_v39 }
  0x4e   :  { %1269 = vmatmul.mubr.msk.f32.gmra.mrb[32].mxu0 %vm99_vm0, %v56_v40 }
  0x4f   :  { %1271 = vmatprep.mubr.msk.f32.mxu0 %vm99_vm0, %v57_v41 }
  0x52   :  { %1272 = vmatmul.mubr.msk.f32.gmra.mrb[34].mxu0 %vm99_vm0, %v58_v42 }
  0x53   :  { %1274 = vmatprep.mubr.msk.f32.mxu0 %vm99_vm0, %v59_v43 }
  0x56   :  { %1275 = vmatmul.mubr.msk.f32.gmra.mrb[36].mxu0 %vm99_vm0, %v60_v44 }
  0x57   :  { %1277 = vmatprep.mubr.msk.f32.mxu0 %vm99_vm0, %v61_v45 }
  0x5a   :  { %1278 = vmatmul.mubr.msk.f32.gmra.mrb[38].mxu0 %vm99_vm0, %v62_v46 }
  0x5b   :  { %1280 = vmatprep.mubr.msk.f32.mxu0 %vm99_vm0, %v63_v47 }
  0x5e   :  { %1281 = vmatmul.mubr.msk.f32.gmra.mrb[40].mxu0 %vm99_vm0, %v64_v48 }
  0x5f   :  { %1283 = vmatprep.mubr.msk.f32.mxu0 %vm99_vm0, %v65_v49 }
  0x62   :  { %1284 = vmatmul.mubr.msk.f32.gmra.mrb[42].mxu0 %vm99_vm0, %v66_v50 }
  0x63   :  { %1286 = vmatprep.mubr.msk.f32.mxu0 %vm99_vm0, %v67_v51 }
  0x66   :  { %1287 = vmatmul.mubr.msk.f32.gmra.mrb[44].mxu0 %vm99_vm0, %v68_v52 }
  0x67   :  { %1289 = vmatprep.mubr.msk.f32.mxu0 %vm99_vm0, %v69_v53 }
  0x6a   :  { %1290 = vmatmul.mubr.msk.f32.gmra.mrb[46].mxu0 %vm99_vm0, %v70_v54 }
  0x6b   :  { %1292 = vmatprep.mubr.msk.f32.mxu0 %vm99_vm0, %v71_v55 }
  0x6e   :  { %1293 = vmatmul.mubr.msk.f32.gmra.mrb[48].mxu0 %vm99_vm0, %v72_v56 }
  0x6f   :  { %1295 = vmatprep.mubr.msk.f32.mxu0 %vm99_vm0, %v73_v57 }
  0x72   :  { %1296 = vmatmul.mubr.msk.f32.gmra.mrb[50].mxu0 %vm99_vm0, %v74_v58 }
  0x73   :  { %1298 = vmatprep.mubr.msk.f32.mxu0 %vm99_vm0, %v75_v59 }
  0x76   :  { %1299 = vmatmul.mubr.msk.f32.gmra.mrb[52].mxu0 %vm99_vm0, %v76_v60 }
  0x77   :  { %1301 = vmatprep.mubr.msk.f32.mxu0 %vm99_vm0, %v77_v61 }
  0x7a   :  { %1302 = vmatmul.mubr.msk.f32.gmra.mrb[54].mxu0 %vm99_vm0, %v78_v62 }
  0x7b   :  { %1304 = vmatprep.mubr.msk.f32.mxu0 %vm99_vm0, %v79_v63 }
  0x7e   :  { %1305 = vmatmul.mubr.msk.f32.gmra.mrb[56].mxu0 %vm99_vm0, %v80_v0 }
  0x7f   :  { %1307 = vmatprep.mubr.msk.f32.mxu0 %vm99_vm0, %v81_v1 }
  0x82   :  { %1308 = vmatmul.mubr.msk.f32.gmra.mrb[58].mxu0 %vm99_vm0, %v82_v2 }
  0x83   :  { %1310 = vmatprep.mubr.msk.f32.mxu0 %vm99_vm0, %v83_v3 }
  0x86   :  { %1311 = vmatmul.mubr.msk.f32.gmra.mrb[60].mxu0 %vm99_vm0, %v84_v4 }
  0x87   :  { %1313 = vmatprep.mubr.msk.f32.mxu0 %vm99_vm0, %v85_v5 }
  0x8a   :  { %1314 = vmatmul.mubr.msk.f32.gmra.mrb[62].mxu0 %vm99_vm0, %v86_v6 }
  0xe1   :  { %v1222_v9 = vpop.f32.mrb[0].mxu0 }
  0xe2   :  { %v368_v10 = vadd.f32 %v1222_v9, %v1765_v8  ;;  %v362_v11 = vpop.f32.mrb[1].mxu0 }
  0xe3   :  { %v363_v12 = vadd.f32 %v1765_v8, %v362_v11 }
  0xe4   :  { %v682_v13 = vmax.f32 %v368_v10, 0.0 }
  0xe5   :  { %v681_v14 = vmax.f32 %v363_v12, 0.0  ;;  %v1225_v15 = vpop.f32.mrb[2].mxu0 }
  0xe6   :  { %v378_v16 = vadd.f32 %v1225_v15, %v1765_v8  ;;  %v372_v17 = vpop.f32.mrb[3].mxu0 }
  0xe7   :  { %v373_v18 = vadd.f32 %v1765_v8, %v372_v17  ;;  %v1361_v19 = vpack.c.bf16 %v682_v13, %v681_v14 }
  0xe8   :  { %v684_v20 = vmax.f32 %v378_v16, 0.0 }
  0xe9   :  { %v683_v21 = vmax.f32 %v373_v18, 0.0  ;;  %v1228_v22 = vpop.f32.mrb[4].mxu0 }
  0xea   :  { %v388_v23 = vadd.f32 %v1228_v22, %v1765_v8  ;;  %v382_v24 = vpop.f32.mrb[5].mxu0 }
  0xeb   :  { %v1772_v25 = vpack.c.bf16 %v684_v20, %v683_v21  ;;  %v383_v26 = vadd.f32 %v1765_v8, %v382_v24 }
  0xec   :  { %v686_v27 = vmax.f32 %v388_v23, 0.0 }
  0xed   :  { %v685_v28 = vmax.f32 %v383_v26, 0.0  ;;  %v1231_v29 = vpop.f32.mrb[6].mxu0 }
  0xee   :  { %v398_v30 = vadd.f32 %v1231_v29, %v1765_v8  ;;  %v392_v31 = vpop.f32.mrb[7].mxu0 }
  0xef   :  { %v1776_v32 = vpack.c.bf16 %v686_v27, %v685_v28  ;;  %v393_v33 = vadd.f32 %v1765_v8, %v392_v31 }
  0xf0   :  { %v688_v34 = vmax.f32 %v398_v30, 0.0 }
  0xf1   :  { %v687_v35 = vmax.f32 %v393_v33, 0.0  ;;  %v1234_v36 = vpop.f32.mrb[8].mxu0 }
  0xf2   :  { %v408_v37 = vadd.f32 %v1234_v36, %v1765_v8  ;;  %v402_v38 = vpop.f32.mrb[9].mxu0 }
  0xf3   :  { %v1780_v39 = vpack.c.bf16 %v688_v34, %v687_v35  ;;  %v403_v40 = vadd.f32 %v1765_v8, %v402_v38 }
  0xf4   :  { %v690_v41 = vmax.f32 %v408_v37, 0.0 }
  0xf5   :  { %v689_v42 = vmax.f32 %v403_v40, 0.0  ;;  %v1237_v43 = vpop.f32.mrb[10].mxu0 }
  0xf6   :  { %v418_v44 = vadd.f32 %v1237_v43, %v1765_v8  ;;  %v412_v45 = vpop.f32.mrb[11].mxu0 }
  0xf7   :  { %v1784_v46 = vpack.c.bf16 %v690_v41, %v689_v42  ;;  %v413_v47 = vadd.f32 %v1765_v8, %v412_v45 }
  0xf8   :  { %v692_v48 = vmax.f32 %v418_v44, 0.0 }
  0xf9   :  { %v691_v49 = vmax.f32 %v413_v47, 0.0  ;;  %v1240_v50 = vpop.f32.mrb[12].mxu0 }
  0xfa   :  { %v428_v51 = vadd.f32 %v1240_v50, %v1765_v8  ;;  %v422_v52 = vpop.f32.mrb[13].mxu0 }
  0xfb   :  { %v1788_v53 = vpack.c.bf16 %v692_v48, %v691_v49  ;;  %v423_v54 = vadd.f32 %v1765_v8, %v422_v52 }
  0xfc   :  { %v694_v55 = vmax.f32 %v428_v51, 0.0 }
  0xfd   :  { %v693_v56 = vmax.f32 %v423_v54, 0.0  ;;  %v1243_v57 = vpop.f32.mrb[14].mxu0 }
  0xfe   :  { %v438_v58 = vadd.f32 %v1243_v57, %v1765_v8  ;;  %v432_v59 = vpop.f32.mrb[15].mxu0 }
  0xff   :  { %v1792_v60 = vpack.c.bf16 %v694_v55, %v693_v56  ;;  %v433_v61 = vadd.f32 %v1765_v8, %v432_v59 }
 0x100   :  { %v696_v62 = vmax.f32 %v438_v58, 0.0 }
 0x101   :  { %v695_v63 = vmax.f32 %v433_v61, 0.0  ;;  %v1246_v0 = vpop.f32.mrb[16].mxu0 }
 0x102   :  { %v448_v1 = vadd.f32 %v1246_v0, %v1765_v8  ;;  %v442_v2 = vpop.f32.mrb[17].mxu0 }
 0x103   :  { %v1796_v3 = vpack.c.bf16 %v696_v62, %v695_v63  ;;  %v443_v4 = vadd.f32 %v1765_v8, %v442_v2 }
 0x104   :  { %v698_v5 = vmax.f32 %v448_v1, 0.0 }
 0x105   :  { %v697_v6 = vmax.f32 %v443_v4, 0.0  ;;  %v1249_v7 = vpop.f32.mrb[18].mxu0 }
 0x106   :  { %v458_v9 = vadd.f32 %v1249_v7, %v1765_v8  ;;  %v452_v10 = vpop.f32.mrb[19].mxu0  ;;  %v748_v7 = vld [vmem:[%s1941_s3 + $0x18] sm:$0xff] }
 0x107   :  { %v453_v11 = vadd.f32 %v1765_v8, %v452_v10  ;;  %v1359_v12 = vpack.c.bf16 %v698_v5, %v697_v6  ;;  %v745_v5 = vld [vmem:[%s1941_s3] sm:$0xff] }
 0x108   :  { %v700_v13 = vmax.f32 %v458_v9, 0.0 }
 0x109   :  { %v699_v14 = vmax.f32 %v453_v11, 0.0  ;;  %v1252_v15 = vpop.f32.mrb[20].mxu0  ;;  %1360 = vmatprep.subr.bf16.mxu1 %v1359_v12 }
 0x10a   :  { %v468_v16 = vadd.f32 %v1252_v15, %v1765_v8  ;;  %v462_v17 = vpop.f32.mrb[21].mxu0  ;;  %1362 = vmatpush3.bf16.msra.mxu1 %v1361_v19 }
 0x10b   :  { %v1363_v18 = vpack.c.bf16 %v700_v13, %v699_v14  ;;  %v463_v20 = vadd.f32 %v1765_v8, %v462_v17 }
 0x10c   :  { %v702_v21 = vmax.f32 %v468_v16, 0.0 }
 0x10d   :  { %v701_v22 = vmax.f32 %v463_v20, 0.0  ;;  %v1255_v23 = vpop.f32.mrb[22].mxu0  ;;  %1364 = vmatprep.subr.bf16.mxu1 %v1363_v18 }
 0x10e   :  { %v478_v24 = vadd.f32 %v1255_v23, %v1765_v8  ;;  %v472_v26 = vpop.f32.mrb[23].mxu0  ;;  %1366 = vmatpush3.bf16.msra.mxu1 %v1772_v25 }
 0x10f   :  { %v1367_v27 = vpack.c.bf16 %v702_v21, %v701_v22  ;;  %v473_v28 = vadd.f32 %v1765_v8, %v472_v26 }
 0x110   :  { %v704_v29 = vmax.f32 %v478_v24, 0.0 }
 0x111   :  { %v703_v30 = vmax.f32 %v473_v28, 0.0  ;;  %v1258_v31 = vpop.f32.mrb[24].mxu0  ;;  %1368 = vmatprep.subr.bf16.mxu1 %v1367_v27 }
 0x112   :  { %v488_v19 = vadd.f32 %v1258_v31, %v1765_v8  ;;  %v482_v33 = vpop.f32.mrb[25].mxu0  ;;  %1370 = vmatpush3.bf16.msra.mxu1 %v1776_v32 }
 0x113   :  { %v1371_v34 = vpack.c.bf16 %v704_v29, %v703_v30  ;;  %v483_v35 = vadd.f32 %v1765_v8, %v482_v33 }
 0x114   :  { %v706_v36 = vmax.f32 %v488_v19, 0.0 }
 0x115   :  { %v705_v37 = vmax.f32 %v483_v35, 0.0  ;;  %v1261_v38 = vpop.f32.mrb[26].mxu0  ;;  %1372 = vmatprep.subr.bf16.mxu1 %v1371_v34 }
 0x116   :  { %v498_v25 = vadd.f32 %v1261_v38, %v1765_v8  ;;  %v492_v40 = vpop.f32.mrb[27].mxu0  ;;  %1374 = vmatpush3.bf16.msra.mxu1 %v1780_v39 }
 0x117   :  { %v1375_v41 = vpack.c.bf16 %v706_v36, %v705_v37  ;;  %v493_v42 = vadd.f32 %v1765_v8, %v492_v40 }
 0x118   :  { %v708_v43 = vmax.f32 %v498_v25, 0.0 }
 0x119   :  { %v707_v44 = vmax.f32 %v493_v42, 0.0  ;;  %v1264_v45 = vpop.f32.mrb[28].mxu0  ;;  %1376 = vmatprep.subr.bf16.mxu1 %v1375_v41 }
 0x11a   :  { %v508_v32 = vadd.f32 %v1264_v45, %v1765_v8  ;;  %v502_v47 = vpop.f32.mrb[29].mxu0  ;;  %1378 = vmatpush3.bf16.msra.mxu1 %v1784_v46 }
 0x11b   :  { %v1379_v48 = vpack.c.bf16 %v708_v43, %v707_v44  ;;  %v503_v49 = vadd.f32 %v1765_v8, %v502_v47 }
 0x11c   :  { %v710_v50 = vmax.f32 %v508_v32, 0.0 }
 0x11d   :  { %v709_v51 = vmax.f32 %v503_v49, 0.0  ;;  %v1267_v52 = vpop.f32.mrb[30].mxu0  ;;  %1380 = vmatprep.subr.bf16.mxu1 %v1379_v48 }
 0x11e   :  { %v518_v39 = vadd.f32 %v1267_v52, %v1765_v8  ;;  %v512_v54 = vpop.f32.mrb[31].mxu0  ;;  %1382 = vmatpush3.bf16.msra.mxu1 %v1788_v53 }
 0x11f   :  { %v1383_v55 = vpack.c.bf16 %v710_v50, %v709_v51  ;;  %v513_v56 = vadd.f32 %v1765_v8, %v512_v54 }
 0x120   :  { %v712_v57 = vmax.f32 %v518_v39, 0.0 }
 0x121   :  { %v711_v58 = vmax.f32 %v513_v56, 0.0  ;;  %v1270_v59 = vpop.f32.mrb[32].mxu0  ;;  %1384 = vmatprep.subr.bf16.mxu1 %v1383_v55 }
 0x122   :  { %v528_v46 = vadd.f32 %v1270_v59, %v1765_v8  ;;  %v522_v61 = vpop.f32.mrb[33].mxu0  ;;  %1386 = vmatpush3.bf16.msra.mxu1 %v1792_v60 }
 0x123   :  { %v1387_v62 = vpack.c.bf16 %v712_v57, %v711_v58  ;;  %v523_v63 = vadd.f32 %v1765_v8, %v522_v61 }
 0x124   :  { %v714_v0 = vmax.f32 %v528_v46, 0.0 }
 0x125   :  { %v713_v1 = vmax.f32 %v523_v63, 0.0  ;;  %v1273_v2 = vpop.f32.mrb[34].mxu0  ;;  %1388 = vmatprep.subr.bf16.mxu1 %v1387_v62 }
 0x126   :  { %v538_v53 = vadd.f32 %v1273_v2, %v1765_v8  ;;  %v532_v4 = vpop.f32.mrb[35].mxu0  ;;  %1390 = vmatpush3.bf16.msra.mxu1 %v1796_v3 }
 0x127   :  { %v1826_v6 = vpack.c.bf16 %v714_v0, %v713_v1  ;;  %v533_v60 = vadd.f32 %v1765_v8, %v532_v4 }
 0x128   :  { %v716_v9 = vmax.f32 %v538_v53, 0.0 }
 0x129   :  { %v715_v10 = vmax.f32 %v533_v60, 0.0  ;;  %v1276_v11 = vpop.f32.mrb[36].mxu0  ;;  %814 = vmatmul.mubr.f32.vlgmr.msra.gmra.mrb[0].mxu1 %v745_v5 }
 0x12a   :  { %v548_v12 = vadd.f32 %v1276_v11, %v1765_v8  ;;  %v542_v13 = vpop.f32.mrb[37].mxu0  ;;  %883 = vmatprep.mubr.f32.mxu1 %v748_v7 }
 0x12b   :  { %v1833_v3 = vpack.c.bf16 %v716_v9, %v715_v10  ;;  %v543_v14 = vadd.f32 %v1765_v8, %v542_v13 }
 0x12c   :  { %v718_v15 = vmax.f32 %v548_v12, 0.0 }
 0x12d   :  { %v717_v16 = vmax.f32 %v543_v14, 0.0  ;;  %v1279_v17 = vpop.f32.mrb[38].mxu0 }
 0x12e   :  { %v558_v18 = vadd.f32 %v1279_v17, %v1765_v8  ;;  %v552_v20 = vpop.f32.mrb[39].mxu0 }
 0x12f   :  { %v1837_v21 = vpack.c.bf16 %v718_v15, %v717_v16  ;;  %v553_v22 = vadd.f32 %v1765_v8, %v552_v20 }
 0x130   :  { %v720_v23 = vmax.f32 %v558_v18, 0.0 }
 0x131   :  { %v719_v24 = vmax.f32 %v553_v22, 0.0  ;;  %v1282_v26 = vpop.f32.mrb[40].mxu0 }
 0x132   :  { %v568_v27 = vadd.f32 %v1282_v26, %v1765_v8  ;;  %v562_v28 = vpop.f32.mrb[41].mxu0 }
 0x133   :  { %v1841_v29 = vpack.c.bf16 %v720_v23, %v719_v24  ;;  %v563_v30 = vadd.f32 %v1765_v8, %v562_v28 }
 0x134   :  { %v722_v31 = vmax.f32 %v568_v27, 0.0 }
 0x135   :  { %v721_v19 = vmax.f32 %v563_v30, 0.0  ;;  %v1285_v33 = vpop.f32.mrb[42].mxu0 }
 0x136   :  { %v578_v34 = vadd.f32 %v1285_v33, %v1765_v8  ;;  %v572_v35 = vpop.f32.mrb[43].mxu0 }
 0x137   :  { %v1845_v36 = vpack.c.bf16 %v722_v31, %v721_v19  ;;  %v573_v37 = vadd.f32 %v1765_v8, %v572_v35 }
 0x138   :  { %v724_v38 = vmax.f32 %v578_v34, 0.0 }
 0x139   :  { %v723_v25 = vmax.f32 %v573_v37, 0.0  ;;  %v1288_v40 = vpop.f32.mrb[44].mxu0 }
 0x13a   :  { %v588_v41 = vadd.f32 %v1288_v40, %v1765_v8  ;;  %v582_v42 = vpop.f32.mrb[45].mxu0 }
 0x13b   :  { %v1849_v43 = vpack.c.bf16 %v724_v38, %v723_v25  ;;  %v583_v44 = vadd.f32 %v1765_v8, %v582_v42 }
 0x13c   :  { %v726_v45 = vmax.f32 %v588_v41, 0.0 }
 0x13d   :  { %v725_v32 = vmax.f32 %v583_v44, 0.0  ;;  %v1291_v47 = vpop.f32.mrb[46].mxu0 }
 0x13e   :  { %v598_v48 = vadd.f32 %v1291_v47, %v1765_v8  ;;  %v592_v49 = vpop.f32.mrb[47].mxu0 }
 0x13f   :  { %v1853_v50 = vpack.c.bf16 %v726_v45, %v725_v32  ;;  %v593_v51 = vadd.f32 %v1765_v8, %v592_v49  ;;  %v747_v49 = vld [vmem:[%s1941_s3 + $0x10] sm:$0xff] }
 0x140   :  { %v728_v52 = vmax.f32 %v598_v48, 0.0 }
 0x141   :  { %v727_v39 = vmax.f32 %v593_v51, 0.0  ;;  %v1294_v54 = vpop.f32.mrb[48].mxu0  ;;  %v1450_v51 = vmov 0.0|0.0  }
 0x142   :  { %v608_v55 = vadd.f32 %v1294_v54, %v1765_v8  ;;  %v602_v56 = vpop.f32.mrb[49].mxu0 }
 0x143   :  { %v1857_v57 = vpack.c.bf16 %v728_v52, %v727_v39  ;;  %v603_v58 = vadd.f32 %v1765_v8, %v602_v56  ;;  %v892_v39 = vld [vmem:[%s1943_s4 + $0x18] sm:$0xff]  ;;  %v894_v56 = vld [vmem:[%s1943_s4 + $0x28] sm:$0xff] }
 0x144   :  { %v730_v59 = vmax.f32 %v608_v55, 0.0  ;;  %v893_v55 = vld [vmem:[%s1943_s4 + $0x20] sm:$0xff] }
 0x145   :  { %v729_v46 = vmax.f32 %v603_v58, 0.0  ;;  %v1297_v61 = vpop.f32.mrb[50].mxu0  ;;  %v895_v58 = vld [vmem:[%s1943_s4 + $0x30] sm:$0xff] }
 0x146   :  { %v618_v62 = vadd.f32 %v1297_v61, %v1765_v8  ;;  %v612_v63 = vpop.f32.mrb[51].mxu0  ;;  %v897_v61 = vld [vmem:[%s1943_s4 + $0x40] sm:$0xff] }
 0x147   :  { %v1391_v0 = vpack.c.bf16 %v730_v59, %v729_v46  ;;  %v613_v1 = vadd.f32 %v1765_v8, %v612_v63  ;;  %v896_v59 = vld [vmem:[%s1943_s4 + $0x38] sm:$0xff] }
 0x148   :  { %v732_v2 = vmax.f32 %v618_v62, 0.0  ;;  %v1433_v46 = vpack.c.bf16 %v896_v59, %v895_v58  ;;  %v898_v62 = vld [vmem:[%s1943_s4 + $0x48] sm:$0xff] }
 0x149   :  { %v731_v53 = vmax.f32 %v613_v1, 0.0  ;;  %v1300_v4 = vpop.f32.mrb[52].mxu0  ;;  %1392 = vmatprep.subr.bf16.mxu1 %v1391_v0  ;;  %v1436_v63 = vpack.c.bf16 %v898_v62, %v897_v61  ;;  %v899_v0 = vld [vmem:[%s1943_s4 + $0x50] sm:$0xff]  ;;  %v900_v1 = vld [vmem:[%s1943_s4 + $0x58] sm:$0xff] }
 0x14a   :  { %v628_v5 = vadd.f32 %v1300_v4, %v1765_v8  ;;  %v622_v60 = vpop.f32.mrb[53].mxu0  ;;  %1394 = vmatpush3.bf16.msra.mxu1 %v1826_v6  ;;  %v902_v4 = vld [vmem:[%s1943_s4 + $0x68] sm:$0xff] }
 0x14b   :  { %v1395_v7 = vpack.c.bf16 %v732_v2, %v731_v53  ;;  %v623_v9 = vadd.f32 %v1765_v8, %v622_v60  ;;  %v1439_v2 = vpack.c.bf16 %v900_v1, %v899_v0  ;;  %v901_v53 = vld [vmem:[%s1943_s4 + $0x60] sm:$0xff]  ;;  %v903_v60 = vld [vmem:[%s1943_s4 + $0x70] sm:$0xff] }
 0x14c   :  { %v734_v10 = vmax.f32 %v628_v5, 0.0  ;;  %v1442_v5 = vpack.c.bf16 %v902_v4, %v901_v53 }
 0x14d   :  { %v733_v11 = vmax.f32 %v623_v9, 0.0  ;;  %v1303_v12 = vpop.f32.mrb[54].mxu0  ;;  %1396 = vmatprep.subr.bf16.mxu1 %v1395_v7  ;;  %v904_v7 = vld [vmem:[%s1943_s4 + $0x78] sm:$0xff] }
 0x14e   :  { %v638_v13 = vadd.f32 %v1303_v12, %v1765_v8  ;;  %v632_v14 = vpop.f32.mrb[55].mxu0  ;;  %1398 = vmatpush3.bf16.msra.mxu1 %v1833_v3  ;;  %v1445_v9 = vpack.c.bf16 %v904_v7, %v903_v60 }
 0x14f   :  { %v1399_v15 = vpack.c.bf16 %v734_v10, %v733_v11  ;;  %v633_v16 = vadd.f32 %v1765_v8, %v632_v14  ;;  %v1452_v10 = vmov 0.0  }
 0x150   :  { %v736_v17 = vmax.f32 %v638_v13, 0.0 }
 0x151   :  { %v735_v18 = vmax.f32 %v633_v16, 0.0  ;;  %v1306_v20 = vpop.f32.mrb[56].mxu0  ;;  %1400 = vmatprep.subr.bf16.mxu1 %v1399_v15 }
 0x152   :  { %v648_v6 = vadd.f32 %v1306_v20, %v1765_v8  ;;  %v642_v22 = vpop.f32.mrb[57].mxu0  ;;  %1402 = vmatpush3.bf16.msra.mxu1 %v1837_v21 }
 0x153   :  { %v1403_v23 = vpack.c.bf16 %v736_v17, %v735_v18  ;;  %v643_v24 = vadd.f32 %v1765_v8, %v642_v22  ;;  %v1053_v18 = vld [vmem:[%s1944_s5] ss:$0 sm:$0xff] }
 0x154   :  { %v738_v26 = vmax.f32 %v648_v6, 0.0 }
 0x155   :  { %v737_v27 = vmax.f32 %v643_v24, 0.0  ;;  %v1309_v28 = vpop.f32.mrb[58].mxu0  ;;  %1404 = vmatprep.subr.bf16.mxu1 %v1403_v23 }
 0x156   :  { %v658_v3 = vadd.f32 %v1309_v28, %v1765_v8  ;;  %v652_v30 = vpop.f32.mrb[59].mxu0  ;;  %1406 = vmatpush3.bf16.msra.mxu1 %v1841_v29 }
 0x157   :  { %v1407_v31 = vpack.c.bf16 %v738_v26, %v737_v27  ;;  %v653_v19 = vadd.f32 %v1765_v8, %v652_v30 }
 0x158   :  { %v740_v33 = vmax.f32 %v658_v3, 0.0 }
 0x159   :  { %v739_v34 = vmax.f32 %v653_v19, 0.0  ;;  %v1312_v35 = vpop.f32.mrb[60].mxu0  ;;  %1408 = vmatprep.subr.bf16.mxu1 %v1407_v31 }
 0x15a   :  { %v668_v21 = vadd.f32 %v1312_v35, %v1765_v8  ;;  %v662_v37 = vpop.f32.mrb[61].mxu0  ;;  %1410 = vmatpush3.bf16.msra.mxu1 %v1845_v36 }
 0x15b   :  { %v1411_v38 = vpack.c.bf16 %v740_v33, %v739_v34  ;;  %v663_v25 = vadd.f32 %v1765_v8, %v662_v37 }
 0x15c   :  { %v742_v40 = vmax.f32 %v668_v21, 0.0 }
 0x15d   :  { %v741_v41 = vmax.f32 %v663_v25, 0.0  ;;  %v1315_v42 = vpop.f32.mrb[62].mxu0  ;;  %1412 = vmatprep.subr.bf16.mxu1 %v1411_v38 }
 0x15e   :  { %v678_v29 = vadd.f32 %v1315_v42, %v1765_v8  ;;  %v672_v44 = vpop.f32.mrb[63].mxu0  ;;  %1414 = vmatpush3.bf16.msra.mxu1 %v1849_v43  ;;  %v890_v43 = vld [vmem:[%s1943_s4 + $0x8] sm:$0xff] }
 0x15f   :  { %v1415_v45 = vpack.c.bf16 %v742_v40, %v741_v41  ;;  %v673_v32 = vadd.f32 %v1765_v8, %v672_v44  ;;  %v889_v8 = vld [vmem:[%s1943_s4] sm:$0xff] }
 0x160   :  { %v744_v47 = vmax.f32 %v678_v29, 0.0  ;;  %v1424_v52 = vpack.c.bf16 %v890_v43, %v889_v8 }
 0x161   :  { %v743_v48 = vmax.f32 %v673_v32, 0.0  ;;  %1416 = vmatprep.subr.bf16.mxu1 %v1415_v45 }
 0x162   :  { %1418 = vmatpush3.bf16.msra.mxu1 %v1853_v50  ;;  %v891_v50 = vld [vmem:[%s1943_s4 + $0x10] sm:$0xff] }
 0x163   :  { %v1419_v36 = vpack.c.bf16 %v744_v47, %v743_v48  ;;  %v1427_v54 = vpack.c.bf16 %v892_v39, %v891_v50 }
 0x165   :  { %1420 = vmatprep.subr.bf16.mxu1 %v1419_v36 }
 0x166   :  { %1422 = vmatpush3.bf16.msra.mxu1 %v1857_v57  ;;  %v1430_v57 = vpack.c.bf16 %v894_v56, %v893_v55 }
 0x167   :  { %1423 = vmatprep.subr.bf16.mxu1 %v1450_v51 }
 0x169   :  { %884 = vmatmul.mubr.f32.vlgmr.msra.gmra.mrb[2].mxu1 %v747_v49 }
 0x16a   :  { %1425 = vmatpush3.bf16.msra.mxu1 %v1424_v52  ;;  %1348 = vmatprep.mubr.msk.f32.mxu1 %vm1451_vm2, %v1452_v10 }
 0x16b   :  { %1426 = vmatprep.subr.bf16.mxu1 %v1450_v51 }
 0x16e   :  { %1428 = vmatpush3.bf16.msra.mxu1 %v1427_v54 }
 0x16f   :  { %1429 = vmatprep.subr.bf16.mxu1 %v1450_v51 }
 0x172   :  { %1431 = vmatpush3.bf16.msra.mxu1 %v1430_v57 }
 0x173   :  { %1432 = vmatprep.subr.bf16.mxu1 %v1450_v51 }
 0x176   :  { %1434 = vmatpush3.bf16.msra.mxu1 %v1433_v46 }
 0x177   :  { %1435 = vmatprep.subr.bf16.mxu1 %v1450_v51 }
 0x17a   :  { %1437 = vmatpush3.bf16.msra.mxu1 %v1436_v63 }
 0x17b   :  { %1438 = vmatprep.subr.bf16.mxu1 %v1450_v51 }
 0x17e   :  { %1440 = vmatpush3.bf16.msra.mxu1 %v1439_v2 }
 0x17f   :  { %1441 = vmatprep.subr.bf16.mxu1 %v1450_v51 }
 0x182   :  { %1443 = vmatpush3.bf16.msra.mxu1 %v1442_v5 }
 0x183   :  { %1444 = vmatprep.subr.bf16.mxu1 %v1450_v51 }
 0x186   :  { %1446 = vmatpush3.bf16.msra.mxu1 %v1445_v9 }
 0x1fc   :  { %v1155_v11 = vpop.f32.mrb[0].mxu1 }
 0x1fd   :  { %v1156_v12 = vpop.f32.mrb[1].mxu1 }
 0x1fe   :  { %v1157_v13 = vadd.f32 %v1156_v12, %v1155_v11 }
 0x23c   :  { %v1190_v14 = vpop.f32.mrb[2].mxu1 }
 0x23d   :  { %v1191_v15 = vpop.f32.mrb[3].mxu1 }
 0x23e   :  { %v1192_v16 = vadd.f32 %v1191_v15, %v1190_v14 }
 0x240   :  { %v886_v17 = vadd.f32 %v1192_v16, %v1157_v13 }
 0x242   :  { %1349 = vmatmul.mubr.f32.vlgmr.msra.gmra.mrb[4].mxu1 %v886_v17 }
 0x315   :  { %v978_v20 = vpop.f32.mrb[4].mxu1 }
 0x316   :  { %v979_v6 = vadd.f32 %v1053_v18, %v978_v20  ;;  %v1350_v22 = vpop.f32.mrb[5].mxu1 }
 0x318   :  { %982 = vst [vmem:[%s1945_s6] sm:$0xff] %v979_v6 }

</bundles_post_ra>
